<compile_context>
chip_gen: v7x
topology: tpu7x:2x2x1
jax: 0.10.0
libtpu: 0.0.40
codegen_flags: <defaults>
</compile_context>

<pallas_src>
import functools
import math

import jax
import jax.numpy as jnp
from jax.experimental import pallas as pl
from jax.experimental.pallas import tpu as pltpu


def _cdiv(a, b):
    return -(-a // b)


def _round_down(x, m):
    return (x // m) * m


def _round_up(x, m):
    return ((x + m - 1) // m) * m


def _tpu_vmem_capacity():
    try:
        info = pltpu.get_tpu_info()
        cap = int(getattr(info, "vmem_capacity_bytes", 0) or 0)
        if cap > 0:
            return cap
    except Exception:
        pass
    return 64 * 1024 * 1024  # conservative: assume v7x-sized VMEM


def _max_argmax_mid_kernel(x_ref, val_ref, idx_ref, vmax_sc, vidx_sc, *,
                           is_float, mask_k, k_total, min_val):
    """Reduce over axis 1 of a (to, tk, ti) block; results are lane-dense (to, ti)."""
    k = pl.program_id(2)
    nk = pl.num_programs(2)
    x = x_ref[...]                                   # (to, tk, ti)
    tk = x.shape[1]

    ids = jax.lax.broadcasted_iota(jnp.int32, x.shape, 1)
    if mask_k:
        # Ragged reduce-axis edge: neutralize padded sublanes.
        valid = (ids + k * tk) < k_total
        x = jnp.where(valid, x, jnp.asarray(min_val, dtype=x.dtype))

    m = jnp.max(x, axis=1)                           # (to, ti)  local max
    val_cand = jnp.min(jnp.where(x == m[:, None, :], ids, tk), axis=1)
    if is_float:
        # NaN rows: value is NaN, index is the first NaN (torch/jnp semantics).
        # Select at the *reduced* shape to keep full-shape VALU work minimal.
        nan_cand = jnp.min(jnp.where(jnp.isnan(x), ids, tk), axis=1)
        li = jnp.where(nan_cand < tk, nan_cand, val_cand)
    else:
        li = val_cand
    gi = li + k * tk                                 # global index along dim

    @pl.when(k == 0)
    def _init():
        vmax_sc[...] = m
        vidx_sc[...] = gi

    @pl.when(k > 0)
    def _accumulate():
        pm = vmax_sc[...]
        pi = vidx_sc[...]
        take = m > pm                                # ties keep the earlier k tile
        if is_float:
            take = take | (jnp.isnan(m) & ~jnp.isnan(pm))
        vmax_sc[...] = jnp.where(take, m, pm)
        vidx_sc[...] = jnp.where(take, gi, pi)

    @pl.when(k == nk - 1)
    def _flush():
        val_ref[...] = vmax_sc[...].astype(val_ref.dtype)
        idx_ref[...] = vidx_sc[...]


def _max_argmax_last_kernel(x_ref, val_ref, idx_ref, vmax_sc, vidx_sc, *,
                            is_float, mask_n, n_total, min_val):
    """Reduce over the lane axis of a (tm, tn) block; results are (tm, 1)."""
    k = pl.program_id(1)
    nk = pl.num_programs(1)
    x = x_ref[...]                                   # (tm, tn)
    tn = x.shape[1]

    ids = jax.lax.broadcasted_iota(jnp.int32, x.shape, 1)
    if mask_n:
        valid = (ids + k * tn) < n_total
        x = jnp.where(valid, x, jnp.asarray(min_val, dtype=x.dtype))

    m = jnp.max(x, axis=1, keepdims=True)            # (tm, 1)
    val_cand = jnp.min(jnp.where(x == m, ids, tn), axis=1, keepdims=True)
    if is_float:
        nan_cand = jnp.min(jnp.where(jnp.isnan(x), ids, tn), axis=1, keepdims=True)
        li = jnp.where(nan_cand < tn, nan_cand, val_cand)
    else:
        li = val_cand
    gi = li + k * tn

    @pl.when(k == 0)
    def _init():
        vmax_sc[...] = m
        vidx_sc[...] = gi

    @pl.when(k > 0)
    def _accumulate():
        pm = vmax_sc[...]
        pi = vidx_sc[...]
        take = m > pm
        if is_float:
            take = take | (jnp.isnan(m) & ~jnp.isnan(pm))
        vmax_sc[...] = jnp.where(take, m, pm)
        vidx_sc[...] = jnp.where(take, gi, pi)

    @pl.when(k == nk - 1)
    def _flush():
        val_ref[...] = vmax_sc[...].astype(val_ref.dtype)
        idx_ref[...] = vidx_sc[...]


def global_max_pooling(input_maps: jax.Array, dim: int, *, max_block_bytes: int | None = None):
    """Equivalent of torch `input_maps.max(dim)` -> (values, indices).

    Indices are int32 (TPU-friendly).
    """
    ndim = input_maps.ndim
    dim = dim % ndim
    shape = input_maps.shape
    K = shape[dim]
    out_shape_final = shape[:dim] + shape[dim + 1:]
    dtype = input_maps.dtype
    itemsize = jnp.dtype(dtype).itemsize
    is_float = bool(jnp.issubdtype(dtype, jnp.floating))
    sub = max(8, 32 // itemsize)                     # dtype-aware sublane multiple

    if is_float:
        min_val = float("-inf")
    elif dtype == jnp.bool_:
        min_val = False
    else:
        min_val = int(jnp.iinfo(dtype).min)

    # Generation-aware budgets (pure HBM streaming kernel).
    cap = _tpu_vmem_capacity()
    if cap >= 100 * 1024 * 1024:                     # v5e / v6e: 128 MiB physical VMEM
        default_block = 16 * 1024 * 1024
        vmem_limit = 96 * 1024 * 1024
    else:                                            # v7x (64 MiB) or unknown
        default_block = 8 * 1024 * 1024
        vmem_limit = 48 * 1024 * 1024
    if max_block_bytes is None:
        max_block_bytes = default_block
    max_block_bytes = max(4096, min(max_block_bytes, vmem_limit // 3))
    budget_elems = max(1, max_block_bytes // itemsize)
    # TODO(synk): torch returns int64 indices; int32 kept here (TPU-friendly).
    # TODO(synk): sweep pipeline_mode=pl.Buffered(3) on the reduce-axis input
    # spec on v7x if forced block sizes expose per-step DMA latency.

    if dim == ndim - 1:
        # ---------- reduce over the last (lane) axis ----------
        R = math.prod(shape[:-1]) if ndim > 1 else 1
        N = K
        x2 = input_maps.reshape(R, N)

        if N <= 128 or N * sub * itemsize <= max_block_bytes:
            tn = N                                   # whole reduce axis per step
        else:
            tn = max(128, _round_down(min(N, budget_elems // sub), 128))
        mask_n = (tn < N) and (N % tn != 0)

        if R <= sub:
            tm = R
        else:
            rows = max(sub, budget_elems // max(1, tn))
            tm = max(sub, _round_down(min(R, rows), sub))
            if _cdiv(R, tm) < 2:                     # feed both v7x TensorCores
                tm = max(sub, _round_up(_cdiv(R, 2), sub))
        grid = (_cdiv(R, tm), _cdiv(N, tn))

        kernel = functools.partial(_max_argmax_last_kernel, is_float=is_float,
                                   mask_n=mask_n, n_total=N, min_val=min_val)
        # TODO(synk): lane-dense output flush (transpose (tm,1) -> slab) would
        # help short-N reductions on v5e; output traffic is 1/N of input here.
        values, indices = pl.pallas_call(
            kernel,
            out_shape=(
                jax.ShapeDtypeStruct((R, 1), dtype),
                jax.ShapeDtypeStruct((R, 1), jnp.int32),
            ),
            grid_spec=pltpu.PrefetchScalarGridSpec(
                num_scalar_prefetch=0,
                grid=grid,
                in_specs=[pl.BlockSpec((tm, tn), lambda i, k: (i, k))],
                out_specs=[
                    pl.BlockSpec((tm, 1), lambda i, k: (i, 0)),
                    pl.BlockSpec((tm, 1), lambda i, k: (i, 0)),
                ],
                scratch_shapes=[
                    pltpu.VMEM((tm, 1), dtype),
                    pltpu.VMEM((tm, 1), jnp.int32),
                ],
            ),
            compiler_params=pltpu.CompilerParams(
                dimension_semantics=("parallel", "arbitrary"),
                vmem_limit_bytes=vmem_limit,
            ),
            cost_estimate=pl.CostEstimate(
                flops=2 * R * N,
                transcendentals=0,
                bytes_accessed=R * N * itemsize + R * (itemsize + 4),
            ),
        )(x2)
        return values.reshape(out_shape_final), indices.reshape(out_shape_final)

    # ---------- reduce over a leading/middle axis: keep last axis on lanes ----------
    outer = math.prod(shape[:dim]) if dim > 0 else 1
    inner = math.prod(shape[dim + 1:])
    x3 = input_maps.reshape(outer, K, inner)          # pure view: no extra HBM pass

    to_min = outer if outer < sub else sub
    tk_min = K if K < sub else sub

    if inner <= 128:
        ti = inner
    else:
        cap_lanes = max(128, budget_elems // max(1, to_min * tk_min))
        ti = inner if inner <= cap_lanes else max(128, _round_down(cap_lanes, 128))

    rem = max(1, budget_elems // max(1, ti))
    if K <= sub or K * to_min <= rem:
        tk = K                                        # whole reduce axis resident -> 1 k step
    else:
        tk = max(sub, _round_down(rem // max(1, to_min), sub))
    mask_k = (tk < K) and (K % tk != 0)

    rem2 = max(1, budget_elems // max(1, ti * tk))
    if outer <= sub:
        to = outer
    else:
        to = max(sub, _round_down(min(outer, rem2), sub))

    # Guarantee >= 2 steps on a parallel grid axis (both v7x TensorCores work).
    if _cdiv(outer, to) * _cdiv(inner, ti) < 2:
        if outer > sub:
            to = max(sub, _round_up(_cdiv(outer, 2), sub))
        elif inner > 128:
            ti = max(128, _round_up(_cdiv(inner, 2), 128))
    grid = (_cdiv(outer, to), _cdiv(inner, ti), _cdiv(K, tk))

    kernel = functools.partial(_max_argmax_mid_kernel, is_float=is_float,
                               mask_k=mask_k, k_total=K, min_val=min_val)
    values, indices = pl.pallas_call(
        kernel,
        out_shape=(
            jax.ShapeDtypeStruct((outer, inner), dtype),
            jax.ShapeDtypeStruct((outer, inner), jnp.int32),
        ),
        grid_spec=pltpu.PrefetchScalarGridSpec(
            num_scalar_prefetch=0,
            grid=grid,
            in_specs=[pl.BlockSpec((to, tk, ti), lambda i, j, k: (i, k, j))],
            out_specs=[
                pl.BlockSpec((to, ti), lambda i, j, k: (i, j)),
                pl.BlockSpec((to, ti), lambda i, j, k: (i, j)),
            ],
            scratch_shapes=[
                pltpu.VMEM((to, ti), dtype),
                pltpu.VMEM((to, ti), jnp.int32),
            ],
        ),
        compiler_params=pltpu.CompilerParams(
            dimension_semantics=("parallel", "parallel", "arbitrary"),
            vmem_limit_bytes=vmem_limit,
        ),
        cost_estimate=pl.CostEstimate(
            flops=2 * outer * K * inner,
            transcendentals=0,
            bytes_accessed=outer * K * inner * itemsize + outer * inner * (itemsize + 4),
        ),
    )(x3)
    return values.reshape(out_shape_final), indices.reshape(out_shape_final)


if __name__ == "__main__":
    root = jax.random.PRNGKey(0)
    k1, k2, k3, k4, k5, k6 = jax.random.split(root, 6)

    # NCHW input; module constructed with dim=1 (max over channels).
    B, C, H, W = 2, 4, 16, 16
    x = jax.random.normal(k1, (B, C, H, W), dtype=jnp.float32)

    # Case 1: the module's demo configuration (dim != last axis).
    vals, idxs = global_max_pooling(x, 1)
    jax.block_until_ready((vals, idxs))
    assert vals.shape == (B, H, W) and idxs.shape == (B, H, W)
    assert jnp.array_equal(vals, jnp.max(x, axis=1))
    assert jnp.array_equal(idxs, jnp.argmax(x, axis=1).astype(jnp.int32))

    # Case 2: last-axis reduction path (reduce over lanes).
    vals2, idxs2 = global_max_pooling(x, -1)
    jax.block_until_ready((vals2, idxs2))
    assert jnp.array_equal(vals2, jnp.max(x, axis=-1))
    assert jnp.array_equal(idxs2, jnp.argmax(x, axis=-1).astype(jnp.int32))

    # Case 3: tiny VMEM budget forces the cross-tile (k > 0) accumulation path.
    x3 = jax.random.normal(k2, (2, 64, 8, 128), dtype=jnp.float32)
    vals3, idxs3 = global_max_pooling(x3, 1, max_block_bytes=64 * 1024)
    jax.block_until_ready((vals3, idxs3))
    assert jnp.array_equal(vals3, jnp.max(x3, axis=1))
    assert jnp.array_equal(idxs3, jnp.argmax(x3, axis=1).astype(jnp.int32))

    # Case 4: ragged last-axis reduction with in-kernel masking (N not a multiple of tn).
    x4 = jax.random.normal(k3, (16, 1000), dtype=jnp.float32)
    vals4, idxs4 = global_max_pooling(x4, -1, max_block_bytes=16 * 1024)
    jax.block_until_ready((vals4, idxs4))
    assert jnp.array_equal(vals4, jnp.max(x4, axis=-1))
    assert jnp.array_equal(idxs4, jnp.argmax(x4, axis=-1).astype(jnp.int32))

    # Case 5: ragged mid-axis reduction (non-8-multiple K, non-128-multiple inner).
    x5 = jax.random.normal(k4, (4, 100, 130), dtype=jnp.float32)
    vals5, idxs5 = global_max_pooling(x5, 1, max_block_bytes=32 * 1024)
    jax.block_until_ready((vals5, idxs5))
    assert jnp.array_equal(vals5, jnp.max(x5, axis=1))
    assert jnp.array_equal(idxs5, jnp.argmax(x5, axis=1).astype(jnp.int32))

    # Case 6: integer dtype (non-float argmax specialization).
    xi = jax.random.randint(k5, (16, 40), -100, 100, dtype=jnp.int32)
    valsi, idxsi = global_max_pooling(xi, -1)
    jax.block_until_ready((valsi, idxsi))
    assert jnp.array_equal(valsi, jnp.max(xi, axis=-1))
    assert jnp.array_equal(idxsi, jnp.argmax(xi, axis=-1).astype(jnp.int32))

    # Case 7: NaN row -> NaN value, index of the (single) NaN.
    x7 = jax.random.normal(k6, (8, 16), dtype=jnp.float32)
    x7 = x7.at[3, 5].set(jnp.nan)
    vals7, idxs7 = global_max_pooling(x7, -1)
    jax.block_until_ready((vals7, idxs7))
    assert bool(jnp.isnan(vals7[3])) and int(idxs7[3]) == 5
    row_ok = jnp.arange(8) != 3
    assert bool(jnp.all(jnp.where(row_ok, vals7 == jnp.max(x7, axis=-1), True)))
    assert bool(jnp.all(jnp.where(row_ok,
                                  idxs7 == jnp.argmax(x7, axis=-1).astype(jnp.int32),
                                  True)))

    print("KERNEL_OK")
</pallas_src>

<mosaic_0001>
module attributes {stable_mosaic.version = 11 : i64} {
  func.func @_max_argmax_mid_kernel(%arg0: i32, %arg1: i32, %arg2: i32, %arg3: memref<2x4x128xf32, #tpu.memory_space<vmem>>, %arg4: memref<2x128xf32, #tpu.memory_space<vmem>>, %arg5: memref<2x128xi32, #tpu.memory_space<vmem>>, %arg6: memref<2x128xf32, #tpu.memory_space<vmem>>, %arg7: memref<2x128xi32, #tpu.memory_space<vmem>>) attributes {dimension_semantics = [#tpu.dimension_semantics<parallel>, #tpu.dimension_semantics<parallel>, #tpu.dimension_semantics<arbitrary>], iteration_bounds = array<i64: 1, 2, 1>, scalar_prefetch = 0 : i64, scratch_operands = 2 : i64, tpu.core_type = #tpu.core_type<tc>, window_params = [{transform_indices = @transform_0, window_bounds = array<i64: 2, 4, 128>}, {transform_indices = @transform_1, window_bounds = array<i64: 2, 128>}, {transform_indices = @transform_2, window_bounds = array<i64: 2, 128>}]} {
    %c0 = arith.constant 0 : index
    %c0_0 = arith.constant 0 : index
    %c0_1 = arith.constant 0 : index
    %0 = vector.load %arg3[%c0, %c0_0, %c0_1] : memref<2x4x128xf32, #tpu.memory_space<vmem>>, vector<2x4x128xf32>
    %1 = tpu.iota {dimensions = array<i32: 1>} : vector<2x4x128xi32>
    %cst = arith.constant dense<0xFF800000> : vector<2x128xf32>
    %2 = vector.multi_reduction <maximumf>, %0, %cst [1] : vector<2x4x128xf32> to vector<2x128xf32>
    %3 = vector.shape_cast %2 : vector<2x128xf32> to vector<2x1x128xf32>
    %4 = vector.broadcast %3 : vector<2x1x128xf32> to vector<2x4x128xf32>
    %5 = arith.cmpf oeq, %0, %4 : vector<2x4x128xf32>
    %c4_i32 = arith.constant 4 : i32
    %6 = vector.broadcast %c4_i32 : i32 to vector<2x4x128xi32>
    %7 = arith.select %5, %1, %6 : vector<2x4x128xi1>, vector<2x4x128xi32>
    %cst_2 = arith.constant dense<2147483647> : vector<2x128xi32>
    %8 = vector.multi_reduction <minsi>, %7, %cst_2 [1] : vector<2x4x128xi32> to vector<2x128xi32>
    %9 = arith.cmpf one, %0, %0 : vector<2x4x128xf32>
    %c4_i32_3 = arith.constant 4 : i32
    %10 = vector.broadcast %c4_i32_3 : i32 to vector<2x4x128xi32>
    %11 = arith.select %9, %1, %10 : vector<2x4x128xi1>, vector<2x4x128xi32>
    %cst_4 = arith.constant dense<2147483647> : vector<2x128xi32>
    %12 = vector.multi_reduction <minsi>, %11, %cst_4 [1] : vector<2x4x128xi32> to vector<2x128xi32>
    %c4_i32_5 = arith.constant 4 : i32
    %13 = vector.broadcast %c4_i32_5 : i32 to vector<2x128xi32>
    %14 = arith.cmpi slt, %12, %13 : vector<2x128xi32>
    %15 = arith.select %14, %12, %8 : vector<2x128xi1>, vector<2x128xi32>
    %c4_i32_6 = arith.constant 4 : i32
    %16 = arith.muli %arg2, %c4_i32_6 : i32
    %17 = vector.broadcast %16 : i32 to vector<2x128xi32>
    %18 = arith.addi %15, %17 : vector<2x128xi32>
    %c0_i32 = arith.constant 0 : i32
    %19 = arith.cmpi eq, %arg2, %c0_i32 : i32
    %20 = arith.extui %19 : i1 to i32
    %c0_i32_7 = arith.constant 0 : i32
    %21 = arith.cmpi ne, %20, %c0_i32_7 : i32
    scf.if %21 {
      %c0_12 = arith.constant 0 : index
      %c0_13 = arith.constant 0 : index
      %28 = vector.load %arg6[%c0_12, %c0_13] : memref<2x128xf32, #tpu.memory_space<vmem>>, vector<2x128xf32>
      tpu.vector_store %arg6[%c0_12, %c0_13], %2 {strides = array<i32>} : memref<2x128xf32, #tpu.memory_space<vmem>>, vector<2x128xf32>,
      %c0_14 = arith.constant 0 : index
      %c0_15 = arith.constant 0 : index
      %29 = vector.load %arg7[%c0_14, %c0_15] : memref<2x128xi32, #tpu.memory_space<vmem>>, vector<2x128xi32>
      tpu.vector_store %arg7[%c0_14, %c0_15], %18 {strides = array<i32>} : memref<2x128xi32, #tpu.memory_space<vmem>>, vector<2x128xi32>,
    } else {
    }
    %c0_i32_8 = arith.constant 0 : i32
    %22 = arith.cmpi sgt, %arg2, %c0_i32_8 : i32
    %23 = arith.extui %22 : i1 to i32
    %c0_i32_9 = arith.constant 0 : i32
    %24 = arith.cmpi ne, %23, %c0_i32_9 : i32
    scf.if %24 {
      %c0_12 = arith.constant 0 : index
      %c0_13 = arith.constant 0 : index
      %28 = vector.load %arg6[%c0_12, %c0_13] : memref<2x128xf32, #tpu.memory_space<vmem>>, vector<2x128xf32>
      %c0_14 = arith.constant 0 : index
      %c0_15 = arith.constant 0 : index
      %29 = vector.load %arg7[%c0_14, %c0_15] : memref<2x128xi32, #tpu.memory_space<vmem>>, vector<2x128xi32>
      %30 = arith.cmpf ogt, %2, %28 : vector<2x128xf32>
      %31 = arith.cmpf one, %2, %2 : vector<2x128xf32>
      %32 = arith.cmpf one, %28, %28 : vector<2x128xf32>
      %cst_16 = arith.constant dense<true> : vector<2x128xi1>
      %33 = arith.xori %32, %cst_16 : vector<2x128xi1>
      %34 = arith.andi %31, %33 : vector<2x128xi1>
      %35 = arith.ori %30, %34 : vector<2x128xi1>
      %36 = arith.select %35, %2, %28 : vector<2x128xi1>, vector<2x128xf32>
      %c0_17 = arith.constant 0 : index
      %c0_18 = arith.constant 0 : index
      %37 = vector.load %arg6[%c0_17, %c0_18] : memref<2x128xf32, #tpu.memory_space<vmem>>, vector<2x128xf32>
      tpu.vector_store %arg6[%c0_17, %c0_18], %36 {strides = array<i32>} : memref<2x128xf32, #tpu.memory_space<vmem>>, vector<2x128xf32>,
      %38 = arith.select %35, %18, %29 : vector<2x128xi1>, vector<2x128xi32>
      %c0_19 = arith.constant 0 : index
      %c0_20 = arith.constant 0 : index
      %39 = vector.load %arg7[%c0_19, %c0_20] : memref<2x128xi32, #tpu.memory_space<vmem>>, vector<2x128xi32>
      tpu.vector_store %arg7[%c0_19, %c0_20], %38 {strides = array<i32>} : memref<2x128xi32, #tpu.memory_space<vmem>>, vector<2x128xi32>,
    } else {
    }
    %c0_i32_10 = arith.constant 0 : i32
    %25 = arith.cmpi eq, %arg2, %c0_i32_10 : i32
    %26 = arith.extui %25 : i1 to i32
    %c0_i32_11 = arith.constant 0 : i32
    %27 = arith.cmpi ne, %26, %c0_i32_11 : i32
    scf.if %27 {
      %c0_12 = arith.constant 0 : index
      %c0_13 = arith.constant 0 : index
      %28 = vector.load %arg6[%c0_12, %c0_13] : memref<2x128xf32, #tpu.memory_space<vmem>>, vector<2x128xf32>
      %c0_14 = arith.constant 0 : index
      %c0_15 = arith.constant 0 : index
      %29 = vector.load %arg4[%c0_14, %c0_15] : memref<2x128xf32, #tpu.memory_space<vmem>>, vector<2x128xf32>
      tpu.vector_store %arg4[%c0_14, %c0_15], %28 {strides = array<i32>} : memref<2x128xf32, #tpu.memory_space<vmem>>, vector<2x128xf32>,
      %c0_16 = arith.constant 0 : index
      %c0_17 = arith.constant 0 : index
      %30 = vector.load %arg7[%c0_16, %c0_17] : memref<2x128xi32, #tpu.memory_space<vmem>>, vector<2x128xi32>
      %c0_18 = arith.constant 0 : index
      %c0_19 = arith.constant 0 : index
      %31 = vector.load %arg5[%c0_18, %c0_19] : memref<2x128xi32, #tpu.memory_space<vmem>>, vector<2x128xi32>
      tpu.vector_store %arg5[%c0_18, %c0_19], %30 {strides = array<i32>} : memref<2x128xi32, #tpu.memory_space<vmem>>, vector<2x128xi32>,
    } else {
    }
    return
  }
  func.func @transform_0(%arg0: i32, %arg1: i32, %arg2: i32) -> (i32, i32, i32) {
    %c0_i32 = arith.constant 0 : i32
    return %arg0, %arg2, %arg1 : i32, i32, i32
  }
  func.func @transform_1(%arg0: i32, %arg1: i32, %arg2: i32) -> (i32, i32) {
    %c0_i32 = arith.constant 0 : i32
    return %arg0, %arg1 : i32, i32
  }
  func.func @transform_2(%arg0: i32, %arg1: i32, %arg2: i32) -> (i32, i32) {
    %c0_i32 = arith.constant 0 : i32
    return %arg0, %arg1 : i32, i32
  }
}

</mosaic_0001>

<bundles_post_ra>
// kernel: tpu_custom_call.1
= control target key start
LH: loop header
LB: loop body
LE: loop exit
PB: predicated region body
PF: predicated region fallthrough
CT: control target
= control target key end

     0   :  { %8 = vsyncpa [#allocation5], 0  ;;  %s965_s0 = inlined_call_operand.hbm [shape: f32[2,4,256], index: 0, kind: input, shape index: {}]   ;;  %s966_s1 = inlined_call_operand.hbm [shape: f32[2,256], index: 1, kind: output, shape index: {0}]   ;;  %s967_s2 = inlined_call_operand.hbm [shape: s32[2,256], index: 2, kind: output, shape index: {1}]  }
   0x1   :  { %10 = vsyncpa [#allocation5 + $0x1], 0 }
   0x2   :  { %11 = vsyncpa [#allocation6], 0 }
   0x3   :  { %13 = vsyncpa [#allocation6 + $0x1], 0 }
   0x4   :  { %14 = vsyncpa [#allocation9], 0 }
   0x5   :  { %16 = vsyncpa [#allocation9 + $0x1], 0  ;;  %s748_s9 = smov 0   ;;  %s750_s10 = smov 0  }
   0x6   :  { %s752_s11 = smov 0   ;;  %s754_s12 = smov 0  }
   0x7   :  { %s756_s13 = smov 0   ;;  %s758_s14 = smov 0  }
   0x8 LB: > { %s495_s15 = sadd.s32 4294967295, %s725_s14   ;;  %s496_s16 = sadd.s32 4294967294, %s725_s14   ;;  %s725_s14 = sphi %s758_s14, %s22_s14   ;;  %s721_s13 = sphi %s756_s13, %s981_s13   ;;  %s717_s12 = sphi %s754_s12, %s980_s12   ;;  %s713_s11 = sphi %s752_s11, %s979_s11   ;;  %s709_s10 = sphi %s750_s10, %s978_s10   ;;  %s705_s9 = sphi %s748_s9, %s977_s9  }
   0x9   : > { %s37_s17 = sadd.s32 1, %s721_s13  ;;  %s52_s18 = sadd.s32 1, %s713_s11 }
   0xa   : > { %p39_p0 = scmp.ge.s32.totalorder %s37_s17, 2  ;;  %p59_p1 = scmp.ne.s32.totalorder %s713_s11, %s709_s10 }
   0xb   : > { %p60_p2 = scmp.eq.s32.totalorder %s725_s14, 0  ;;  %p65_p3 = scmp.ne.s32.totalorder %s709_s10, %s705_s9 }
   0xc   : > { %s983_s17 = smov (%p39_p0, %s37_s17), 0  ;;  %p66_p5 = scmp.eq.s32.totalorder %s495_s15, 0 }
   0xd   : > { %p789_p4 = por %p60_p2, %p59_p1  ;;  %s48_s20 = ssub.s32 %s721_s13, %s983_s17 }
   0xe   : > { %p91_p6 = scmp.eq.s32.totalorder %s495_s15, 1  ;;  %p50_p7 = scmp.eq.s32.totalorder %s48_s20, 0 }
   0xf   : > { %p795_p8 = por %p66_p5, %p65_p3  ;;  %p97_p10 = scmp.eq.s32.totalorder %s496_s16, 1 }
  0x10   : > { %p799_p9 = por %p91_p6, %p59_p1  ;;  %p528_p13 = scmp.lt.s32.totalorder %s725_s14, 2 }
  0x11   : > { %s804_s23 = scalar_select %p50_p7, %s713_s11, %s52_s18  }
  0x12   : > { %s971_s22 = scalar_select %p799_p9, 1, 0 }
  0x13   : > { %p806_p11 = por %p97_p10, %p65_p3  ;;  %s145_s25 = sand.u32 1, %s713_s11  }
  0x14   : > { %s499_s26 = sshll.u32 %s145_s25, 3  ;;  %s500_s27 = sshll.u32 %s721_s13, 6 }
  0x15   : > { %s972_s24 = scalar_select %p806_p11, 1, 0 }
  0x16   : > { %s817_s30 = scalar_lea.hbm %s965_s0, %s500_s27  ;;  %s149_s3 = scalar_lea.vmem [#allocation4], %s499_s26 }
  0x17   : > { %s160_s4 = sshll.u32 %s149_s3, 4  ;;  %p823_p0 = pnand %p528_p13, %p789_p4  ;;  %s819_s4 = int_to_ptr.vmem [resolvable:$true] %s160_s4 }
  0x18   : > { %s827_s6 = scalar_lea.sflag [#allocation5], %s145_s25  ;;  %s581_s7 = scalar_lea.hbm %s817_s30, 128 }
  0x19   : > { %p582_p1 = scmp.ne.s32.totalorder %s817_s30, %s581_s7  ;;  %p583_p2 = pneg %p823_p0 }
  0x1a   : > { %s586_s16 = scalar_lea.hbm %s965_s0, 256  ;;  %p587_p4 = scmp.lt.u32.totalorder %s817_s30, %s965_s0 }
  0x1b   : > { %p584_p3 = pnand %p583_p2, %p582_p1  ;;  %p588_p6 = scmp.lt.u32.totalorder %s586_s16, %s581_s7 }
  0x1c   : > { %p590_p10 = scmp.lt.u32.totalorder %s581_s7, %s817_s30 }
  0x1d   : > { %p585_p5 = pneg %p584_p3  ;;  %p589_p7 = por %p588_p6, %p587_p4 }
  0x1f   : > { %p591_p13 = por %p590_p10, %p589_p7 }
  0x21   : > { %p592_p12 = pnand %p591_p13, %p585_p5 }
  0x23   : > { %595 = shalt.err (!%p592_p12)
}
  0x24   : > { %s596_s20 = scalar_lea.vmem %s819_s4, 128  ;;  %s727_s25 = smov [#allocation4]  }
  0x25   : > { %p597_p1 = scmp.ne.s32.totalorder %s819_s4, %s596_s20  ;;  %s601_s26 = sshll.u32 %s727_s25, 4  ;;  %s602_s26 = int_to_ptr.vmem [resolvable:$false] %s601_s26 }
  0x26   : > { %s603_s27 = scalar_lea.vmem %s602_s26, 256  ;;  %p604_p9 = scmp.lt.s32.totalorder %s819_s4, %s602_s26 }
  0x27   : > { %p599_p3 = pnand %p597_p1, %p583_p2  ;;  %p605_p4 = scmp.lt.s32.totalorder %s603_s27, %s596_s20 }
  0x29   : > { %p600_p11 = pneg %p599_p3  ;;  %p606_p6 = por %p605_p4, %p604_p9 }
  0x2b   : > { %p607_p7 = pnand %p606_p6, %p600_p11 }
  0x2d   : > { %610 = shalt.err (!%p607_p7)
}
  0x2e   : > { %s728_s28 = smov 128   ;;  %s729_s29 = smov 64  }
  0x2f   : > { %s730_s3 = smov 4   ;;  %p501_p12 = scmp.ge.s32.totalorder %s725_s14, 1 }
  0x30   : > { %520 = dma.hbm_to_vmem [thread:$0]  (!%p823_p0), %s817_s30, 128, %s819_s4, %s827_s6, %s728_s28, %s729_s29, %s730_s3  }
  0x31   : > { %p168_p2 = scmp.lt.s32.totalorder %s725_s14, 3 }
  0x33   : > { %p169_p5 = pnand %p501_p12, %p168_p2 }
  0x34   : > { %s858_s7 = sand.u32 (!%p169_p5), 1, %s709_s10  }
  0x35   : > { %172 = sbr.rel (%p169_p5) target bundleno = 126 (0x7e), region = 24  ;;  %s502_s8 = sshll.u32 (!%p169_p5), %s858_s7, 3 }
  0x36   : > { %s175_s15 = scalar_lea.sflag (!%p169_p5), [#allocation5], %s858_s7  ;;  %s178_s16 = scalar_lea.vmem (!%p169_p5), [#allocation4], %s502_s8 }
  0x3c   : > { %692 = dma.done.wait (%p795_p8), %s175_s15, 128  }
  0x3d   : > { %694 = vsyncadd (%p795_p8), %s175_s15, 4294967168  ;;  %v207_v0 = vlaneseq  ;;  %vm209_vm0 = vcmask 1043456   ;;  %v205_v2 = vld [vmem:[%s178_s16] sm:$0xf]  ;;  %v206_v3 = vld [vmem:[%s178_s16 + $0x4] sm:$0xf] }
  0x3e   : > { %v210_v4 = vsel %vm209_vm0, %v205_v2, -inf  ;;  %v217_v5 = vsel %vm209_vm0, %v206_v3, -inf  ;;  %vm248_vm1 = vcmp.ne.f32.partialorder %v205_v2, %v205_v2  ;;  %vm249_vm2 = vcmp.ne.f32.partialorder %v206_v3, %v206_v3  ;;  %s503_s21 = sshll.u32 %s858_s7, 1  ;;  %s507_s5 = sshll.u32 %s717_s12, 5 }
  0x3f   : > { %v208_v1 = vshrl.u32 %v207_v0, 7  ;;  %v211_v6 = vrot.slane %v210_v4, 4  ;;  %v218_v7 = vrot.slane %v217_v5, 4  ;;  %vm286_vm7 = vcmask 1041409   ;;  %s196_s30 = scalar_lea.vmem [#allocation7], %s503_s21  ;;  %s884_s19 = scalar_lea.hbm %s966_s1, %s507_s5 }
  0x40   : > { %s359_s4 = sshll.u32 %s196_s30, 4  ;;  %s339_s20 = scalar_lea.sflag [#allocation6], %s858_s7  ;;  %s877_s4 = int_to_ptr.vmem [resolvable:$true] %s359_s4 }
  0x41   : > { %v250_v8 = vsel %vm248_vm1, %v208_v1, 4  ;;  %v251_v9 = vsel %vm249_vm2, %v208_v1, 4  ;;  %v212_v12 = vmax.f32 %v210_v4, %v211_v6  ;;  %v219_v13 = vmax.f32 %v217_v5, %v218_v7  ;;  %s611_s25 = scalar_lea.vmem %s877_s4, 32  ;;  %p974_p9 = scmp.ne.s32.totalorder %s971_s22, 0 }
  0x42   : > { %v252_v10 = vsel %vm209_vm0, %v250_v8, 2147483647  ;;  %v262_v11 = vsel %vm209_vm0, %v251_v9, 2147483647  ;;  %p612_p8 = scmp.ne.s32.totalorder %s877_s4, %s611_s25  ;;  %s731_s26 = smov [#allocation7]  }
  0x43   : > { %v253_v14 = vrot.slane %v252_v10, 4  ;;  %v263_v15 = vrot.slane %v262_v11, 4  ;;  %v213_v16 = vrot.slane %v212_v12, 2  ;;  %v220_v17 = vrot.slane %v219_v13, 2  ;;  %s615_s27 = sshll.u32 %s731_s26, 4  ;;  %s616_s27 = int_to_ptr.vmem [resolvable:$false] %s615_s27 }
  0x44   : > { %p613_p11 = pnand %p612_p8, %p974_p9  ;;  %s617_s28 = scalar_lea.vmem %s616_s27, 64 }
  0x45   : > { %vm254_vm3 = vcmp.lt.s32.totalorder %v252_v10, %v253_v14  ;;  %vm264_vm4 = vcmp.lt.s32.totalorder %v262_v11, %v263_v15  ;;  %v214_v20 = vmax.f32 %v212_v12, %v213_v16  ;;  %v221_v21 = vmax.f32 %v219_v13, %v220_v17  ;;  %p618_p10 = scmp.lt.s32.totalorder %s877_s4, %s616_s27  ;;  %p619_p13 = scmp.lt.s32.totalorder %s617_s28, %s611_s25 }
  0x46   : > { %v255_v18 = vsel %vm254_vm3, %v252_v10, %v253_v14  ;;  %v265_v19 = vsel %vm264_vm4, %v262_v11, %v263_v15  ;;  %p614_p0 = pneg %p613_p11 }
  0x47   : > { %v256_v22 = vrot.slane %v255_v18, 2  ;;  %v266_v23 = vrot.slane %v265_v19, 2  ;;  %v215_v24 = vrot.slane %v214_v20, 1  ;;  %v222_v25 = vrot.slane %v221_v21, 1  ;;  %p620_p1 = por %p619_p13, %p618_p10 }
  0x49   : > { %vm257_vm5 = vcmp.lt.s32.totalorder %v255_v18, %v256_v22  ;;  %vm267_vm6 = vcmp.lt.s32.totalorder %v265_v19, %v266_v23  ;;  %v216_v26 = vmax.f32 %v214_v20, %v215_v24  ;;  %v223_v27 = vmax.f32 %v221_v21, %v222_v25  ;;  %p621_p3 = pnand %p620_p1, %p614_p0 }
  0x4a   : > { %v258_v28 = vsel %vm257_vm5, %v255_v18, %v256_v22  ;;  %v268_v29 = vsel %vm267_vm6, %v265_v19, %v266_v23 }
  0x4b   : > { %vm224_vm8 = vcmp.eq.f32.partialorder %v205_v2, %v216_v26  ;;  %vm225_vm9 = vcmp.eq.f32.partialorder %v206_v3, %v223_v27  ;;  %v287_v30 = vsel %vm286_vm7, %v223_v27, %v216_v26  ;;  %v259_v35 = vrot.slane %v258_v28, 1 }
  0x4c   : > { %v226_v31 = vsel %vm224_vm8, %v208_v1, 4  ;;  %v227_v32 = vsel %vm225_vm9, %v208_v1, 4  ;;  %289 = vst [vmem:[#allocation2] sm:$0x3] %v287_v30  ;;  %v269_v36 = vrot.slane %v268_v29, 1 }
  0x4d   : > { %v228_v33 = vsel %vm209_vm0, %v226_v31, 2147483647  ;;  %v238_v34 = vsel %vm209_vm0, %v227_v32, 2147483647  ;;  %vm260_vm12 = vcmp.lt.s32.totalorder %v258_v28, %v259_v35 }
  0x4e   : > { %v229_v37 = vrot.slane %v228_v33, 4  ;;  %v239_v38 = vrot.slane %v238_v34, 4  ;;  %vm270_vm13 = vcmp.lt.s32.totalorder %v268_v29, %v269_v36  ;;  %v261_v44 = vsel %vm260_vm12, %v258_v28, %v259_v35 }
  0x4f   : > { %v271_v45 = vsel %vm270_vm13, %v268_v29, %v269_v36 }
  0x50   : > { %vm230_vm10 = vcmp.lt.s32.totalorder %v228_v33, %v229_v37  ;;  %vm240_vm11 = vcmp.lt.s32.totalorder %v238_v34, %v239_v38 }
  0x51   : > { %v231_v39 = vsel %vm230_vm10, %v228_v33, %v229_v37  ;;  %v241_v40 = vsel %vm240_vm11, %v238_v34, %v239_v38 }
  0x52   : > { %v232_v41 = vrot.slane %v231_v39, 2  ;;  %v242_v42 = vrot.slane %v241_v40, 2 }
  0x53   : > { %v334_v43 = vld [vmem:[#allocation2] sm:$0x3] }
  0x54   : > { %vm233_vm14 = vcmp.lt.s32.totalorder %v231_v39, %v232_v41  ;;  %vm243_vm15 = vcmp.lt.s32.totalorder %v241_v40, %v242_v42  ;;  %335 = vst [vmem:[%s196_s30] sm:$0x3] %v334_v43 }
  0x55   : > { %v234_v46 = vsel %vm233_vm14, %v231_v39, %v232_v41  ;;  %v244_v47 = vsel %vm243_vm15, %v241_v40, %v242_v42 }
  0x56   : > { %624 = shalt.err (!%p621_p3)
}
  0x57   : > { %s625_s29 = scalar_lea.hbm %s884_s19, 32  ;;  %s629_s15 = scalar_lea.hbm %s966_s1, 64 }
  0x58   : > { %p626_p4 = scmp.ne.s32.totalorder %s884_s19, %s625_s29  ;;  %p630_p12 = scmp.lt.u32.totalorder %s884_s19, %s966_s1 }
  0x59   : > { %p631_p2 = scmp.lt.u32.totalorder %s629_s15, %s625_s29  ;;  %p633_p8 = scmp.lt.u32.totalorder %s625_s29, %s884_s19 }
  0x5a   : > { %p627_p6 = pnand %p626_p4, %p974_p9 }
  0x5b   : > { %p632_p5 = por %p631_p2, %p630_p12 }
  0x5c   : > { %p628_p7 = pneg %p627_p6 }
  0x5d   : > { %p634_p11 = por %p633_p8, %p632_p5 }
  0x5f   : > { %p635_p0 = pnand %p634_p11, %p628_p7 }
  0x61   : > { %638 = shalt.err (!%p635_p0)
}
  0x62   : > { %513 = dma.vmem_to_hbm [thread:$0]  (%p974_p9), %s877_s4, 32, %s884_s19, %s339_s20   ;;  %v235_v48 = vrot.slane %v234_v46, 1  ;;  %v245_v49 = vrot.slane %v244_v47, 1  ;;  %vm272_vm0 = vcmp.lt.s32.totalorder %v261_v44, 4  ;;  %vm273_vm1 = vcmp.lt.s32.totalorder %v271_v45, 4 }
  0x63   : > { %s203_s6 = scalar_lea.vmem [#allocation8], %s503_s21  ;;  %s918_s20 = scalar_lea.hbm %s967_s2, %s507_s5 }
  0x64   : > { %vm236_vm2 = vcmp.lt.s32.totalorder %v234_v46, %v235_v48  ;;  %vm246_vm3 = vcmp.lt.s32.totalorder %v244_v47, %v245_v49  ;;  %s374_s18 = sshll.u32 %s203_s6, 4  ;;  %s344_s25 = scalar_lea.sflag [#allocation9], %s858_s7  ;;  %s911_s18 = int_to_ptr.vmem [resolvable:$true] %s374_s18 }
  0x65   : > { %v237_v50 = vsel %vm236_vm2, %v234_v46, %v235_v48  ;;  %v247_v51 = vsel %vm246_vm3, %v244_v47, %v245_v49  ;;  %s639_s26 = scalar_lea.vmem %s911_s18, 32  ;;  %s732_s21 = smov [#allocation8]  }
  0x66   : > { %v274_v52 = vsel %vm272_vm0, %v261_v44, %v237_v50  ;;  %v275_v53 = vsel %vm273_vm1, %v271_v45, %v247_v51  ;;  %p640_p10 = scmp.ne.s32.totalorder %s911_s18, %s639_s26  ;;  %s643_s27 = sshll.u32 %s732_s21, 4  ;;  %s644_s27 = int_to_ptr.vmem [resolvable:$false] %s643_s27 }
  0x67   : > { %v290_v54 = vsel %vm286_vm7, %v275_v53, %v274_v52  ;;  %s645_s12 = scalar_lea.vmem %s644_s27, 64  ;;  %p646_p3 = scmp.lt.s32.totalorder %s911_s18, %s644_s27 }
  0x68   : > { %291 = vst [vmem:[#allocation3] sm:$0x3] %v290_v54  ;;  %p641_p13 = pnand %p640_p10, %p974_p9  ;;  %p647_p4 = scmp.lt.s32.totalorder %s645_s12, %s639_s26 }
  0x6a   : > { %p642_p1 = pneg %p641_p13  ;;  %p648_p6 = por %p647_p4, %p646_p3 }
  0x6c   : > { %p649_p7 = pnand %p648_p6, %p642_p1 }
  0x6f   : > { %v336_v55 = vld [vmem:[#allocation3] sm:$0x3] }
  0x70   : > { %337 = vst [vmem:[%s203_s6] sm:$0x3] %v336_v55 }
  0x71   : > { %652 = shalt.err (!%p649_p7)
}
  0x72   : > { %s653_s7 = scalar_lea.hbm %s918_s20, 32  ;;  %s657_s29 = scalar_lea.hbm %s967_s2, 64 }
  0x73   : > { %p654_p12 = scmp.ne.s32.totalorder %s918_s20, %s653_s7  ;;  %p658_p8 = scmp.lt.u32.totalorder %s918_s20, %s967_s2 }
  0x74   : > { %p659_p11 = scmp.lt.u32.totalorder %s657_s29, %s653_s7  ;;  %p661_p10 = scmp.lt.u32.totalorder %s653_s7, %s918_s20 }
  0x75   : > { %p655_p2 = pnand %p654_p12, %p974_p9 }
  0x76   : > { %p660_p0 = por %p659_p11, %p658_p8 }
  0x77   : > { %p656_p5 = pneg %p655_p2 }
  0x78   : > { %p662_p13 = por %p661_p10, %p660_p0 }
  0x7a   : > { %p663_p1 = pnand %p662_p13, %p656_p5 }
  0x7c   : > { %666 = shalt.err (!%p663_p1)
}
  0x7d   : > { %514 = dma.vmem_to_hbm [thread:$0]  (%p974_p9), %s911_s18, 32, %s918_s20, %s344_s25  }
  0x7e PF: > { %s386_s15 = sand.u32 1, %s705_s9   ;;  %p975_p3 = scmp.ne.s32.totalorder %s972_s24, 0 }
  0x7f   : > { %p976_p4 = scmp.ge.s32.totalorder %s725_s14, 2  ;;  %s387_s16 = scalar_lea.sflag [#allocation6], %s386_s15 }
  0x81   : > { %p522_p6 = pnand %p976_p4, %p975_p3 }
  0x83   : > { %696 = dma.done.wait (!%p522_p6), %s387_s16, 32  }
  0x84   : > { %698 = vsyncadd (!%p522_p6), %s387_s16, 4294967264  ;;  %s396_s30 = scalar_lea.sflag [#allocation9], %s386_s15 }
  0x85   : > { %700 = dma.done.wait (!%p522_p6), %s396_s30, 32  }
  0x86   : > { %702 = vsyncadd (!%p522_p6), %s396_s30, 4294967264  ;;  %s22_s14 = sadd.s32 1, %s725_s14   ;;  %s977_s9 = smov %s709_s10 }
  0x87   : > { %p19_p7 = scmp.ge.s32.totalorder %s22_s14, 4   ;;  %s978_s10 = smov %s713_s11 }
  0x88   : > { %s979_s11 = smov %s804_s23  ;;  %s980_s12 = smov %s721_s13 }
  0x89   : > { %s981_s13 = smov %s983_s17  ;;  %21 = sbr.rel (!%p19_p7) target bundleno = 8 (0x8), region = 98 }
  0x90   :  { %401 = vsyncpa [#allocation5], 1 }
  0x91   :  { %403 = vsyncpa [#allocation5 + $0x1], 1 }
  0x92   :  { %404 = vsyncpa [#allocation6], 1 }
  0x93   :  { %406 = vsyncpa [#allocation6 + $0x1], 1 }
  0x94   :  { %407 = vsyncpa [#allocation9], 1 }
  0x95   :  { %409 = vsyncpa [#allocation9 + $0x1], 1 }

</bundles_post_ra>
